<compile_context>
chip_gen: v6e
topology: v6e:2x2x1
jax: 0.10.0
libtpu: 0.0.40
codegen_flags: <defaults>
</compile_context>

<pallas_src>
import functools
import math

import jax
import jax.numpy as jnp
from jax import lax
from jax.experimental import pallas as pl
from jax.experimental.pallas import tpu as pltpu


# ----------------------------------------------------------------------------
# helpers
# ----------------------------------------------------------------------------
def _pick_tile(dim, target, align=8):
    """Largest divisor of `dim` that is <= target and a multiple of `align`.

    Falls back to the full dimension (always a legal block) when no aligned
    divisor exists -- never silently larger than the dimension itself.
    """
    t = min(dim, target)
    for cand in range(t, 0, -1):
        if cand % align == 0 and dim % cand == 0:
            return cand
    return dim


@functools.lru_cache(maxsize=1)
def _vmem_limit_bytes():
    # Per-generation scoped-VMEM budget instead of the 16/32 MiB defaults.
    try:
        return int(pltpu.get_tpu_info().vmem_capacity_bytes) * 3 // 4
    except Exception:  # pragma: no cover - fall back to compiler default
        return None


@functools.lru_cache(maxsize=1)
def _exp_dtype():
    """bf16 exp on chips with a bf16 EUP (v6e/v7x); f32 elsewhere (v5e)."""
    try:
        kind = jax.devices()[0].device_kind.lower()
    except Exception:  # pragma: no cover
        return jnp.float32
    if "v6" in kind or "v7" in kind or "7x" in kind:
        return jnp.bfloat16
    return jnp.float32


def _compiler_params(dimension_semantics):
    return pltpu.CompilerParams(
        dimension_semantics=dimension_semantics,
        vmem_limit_bytes=_vmem_limit_bytes(),
    )


# ----------------------------------------------------------------------------
# Tiled linear kernel (y = (x @ w + b) * out_scale)
# ----------------------------------------------------------------------------
def _linear_kernel(x_ref, w_ref, b_ref, o_ref, acc_ref, *, n_k, out_scale,
                   compute_dtype):
    @pl.when(pl.program_id(2) == 0)
    def _():
        acc_ref[...] = jnp.zeros_like(acc_ref)

    acc_ref[...] += jnp.dot(
        x_ref[...].astype(compute_dtype),
        w_ref[...].astype(compute_dtype),
        preferred_element_type=jnp.float32,
    )

    @pl.when(pl.program_id(2) == n_k - 1)
    def _():
        y = acc_ref[...] + b_ref[...]
        if out_scale != 1.0:
            y = y * out_scale
        o_ref[...] = y.astype(o_ref.dtype)


def linear(x, w, b, *, tm=512, tn=512, tk=512, out_scale=1.0,
           out_dtype=jnp.float32, compute_dtype=jnp.bfloat16):
    """y = (x @ w + b) * out_scale, tiled over (M, N, K), f32 VMEM accumulator."""
    m, k = x.shape
    n = w.shape[1]
    tm = _pick_tile(m, tm, 8)
    tn = _pick_tile(n, tn, 128)
    tk = _pick_tile(k, tk, 128)
    n_k = k // tk
    b2 = b.reshape(1, n)

    kernel = functools.partial(_linear_kernel, n_k=n_k, out_scale=out_scale,
                               compute_dtype=compute_dtype)
    return pl.pallas_call(
        kernel,
        out_shape=jax.ShapeDtypeStruct((m, n), out_dtype),
        grid=(m // tm, n // tn, n_k),
        in_specs=[
            pl.BlockSpec((tm, tk), lambda i, j, kk: (i, kk)),
            pl.BlockSpec((tk, tn), lambda i, j, kk: (kk, j)),
            pl.BlockSpec((1, tn), lambda i, j, kk: (0, j)),
        ],
        out_specs=pl.BlockSpec((tm, tn), lambda i, j, kk: (i, j)),
        scratch_shapes=[pltpu.VMEM((tm, tn), jnp.float32)],
        compiler_params=_compiler_params(("parallel", "parallel", "arbitrary")),
    )(x, w, b2)


# ----------------------------------------------------------------------------
# Fused QKV projection: one pass over x, three bf16 outputs (no wrapper slicing)
# ----------------------------------------------------------------------------
def _fused_qkv_kernel(x_ref, wq_ref, wk_ref, wv_ref, bq_ref, bk_ref, bv_ref,
                      q_ref, k_ref, v_ref, accq, acck, accv,
                      *, n_k, q_scale, compute_dtype):
    @pl.when(pl.program_id(1) == 0)
    def _():
        accq[...] = jnp.zeros_like(accq)
        acck[...] = jnp.zeros_like(acck)
        accv[...] = jnp.zeros_like(accv)

    x = x_ref[...].astype(compute_dtype)
    accq[...] += jnp.dot(x, wq_ref[...].astype(compute_dtype),
                         preferred_element_type=jnp.float32)
    acck[...] += jnp.dot(x, wk_ref[...].astype(compute_dtype),
                         preferred_element_type=jnp.float32)
    accv[...] += jnp.dot(x, wv_ref[...].astype(compute_dtype),
                         preferred_element_type=jnp.float32)

    @pl.when(pl.program_id(1) == n_k - 1)
    def _():
        # fold the attention scale into the q flush: free, hidden under the matmul
        q_ref[...] = ((accq[...] + bq_ref[...]) * q_scale).astype(q_ref.dtype)
        k_ref[...] = (acck[...] + bk_ref[...]).astype(k_ref.dtype)
        v_ref[...] = (accv[...] + bv_ref[...]).astype(v_ref.dtype)


def fused_qkv_proj(x, wq, bq, wk, bk, wv, bv, *, q_scale=1.0,
                   out_dtype=jnp.bfloat16, compute_dtype=jnp.bfloat16,
                   tm=256, tk=256):
    m, kdim = x.shape
    nq = wq.shape[1]
    nv = wv.shape[1]
    tm = _pick_tile(m, tm, 8)
    tk = _pick_tile(kdim, tk, 128)

    # rough working-set estimate (double-buffered x/weights/outputs + f32 accs)
    est = (2 * tm * tk * 4
           + 2 * tk * (2 * nq + nv) * 4
           + tm * (2 * nq + nv) * 4
           + 2 * tm * (2 * nq + nv) * 2)
    budget = _vmem_limit_bytes() or (96 << 20)
    if est > int(budget * 0.6):
        # TODO(synk): N-tiled fused projection; for now fall back to 3 matmuls
        q = linear(x, wq, bq, out_scale=q_scale, out_dtype=out_dtype,
                   compute_dtype=compute_dtype)
        k = linear(x, wk, bk, out_dtype=out_dtype, compute_dtype=compute_dtype)
        v = linear(x, wv, bv, out_dtype=out_dtype, compute_dtype=compute_dtype)
        return q, k, v

    n_k = kdim // tk
    kernel = functools.partial(_fused_qkv_kernel, n_k=n_k, q_scale=q_scale,
                               compute_dtype=compute_dtype)
    return pl.pallas_call(
        kernel,
        out_shape=(jax.ShapeDtypeStruct((m, nq), out_dtype),
                   jax.ShapeDtypeStruct((m, nq), out_dtype),
                   jax.ShapeDtypeStruct((m, nv), out_dtype)),
        grid=(m // tm, n_k),
        in_specs=[
            pl.BlockSpec((tm, tk), lambda i, kk: (i, kk)),
            pl.BlockSpec((tk, nq), lambda i, kk: (kk, 0)),
            pl.BlockSpec((tk, nq), lambda i, kk: (kk, 0)),
            pl.BlockSpec((tk, nv), lambda i, kk: (kk, 0)),
            pl.BlockSpec((1, nq), lambda i, kk: (0, 0)),
            pl.BlockSpec((1, nq), lambda i, kk: (0, 0)),
            pl.BlockSpec((1, nv), lambda i, kk: (0, 0)),
        ],
        out_specs=(pl.BlockSpec((tm, nq), lambda i, kk: (i, 0)),
                   pl.BlockSpec((tm, nq), lambda i, kk: (i, 0)),
                   pl.BlockSpec((tm, nv), lambda i, kk: (i, 0))),
        scratch_shapes=[pltpu.VMEM((tm, nq), jnp.float32),
                        pltpu.VMEM((tm, nq), jnp.float32),
                        pltpu.VMEM((tm, nv), jnp.float32)],
        compiler_params=_compiler_params(("parallel", "arbitrary")),
    )(x, wq, wk, wv, bq.reshape(1, nq), bk.reshape(1, nq), bv.reshape(1, nv))


# ----------------------------------------------------------------------------
# Attention kernel: heads packed per grid step, grid = (batch, L-blocks)
# Q arrives pre-scaled by 1/sqrt(d_k); all q/k/v blocks are bf16 in HBM.
# ----------------------------------------------------------------------------
def _mha_attn_kernel(q_ref, k_ref, v_ref, o_ref, *maybe_w_ref,
                     n_head, d_k, d_v, is_causal, exp_dtype):
    # q_ref: (1, tl, H*d_k), k_ref: (1, S, H*d_k), v_ref: (1, S, H*d_v)
    # o_ref: (1, tl, H*d_v), optional w_ref: (1, H, tl, S)
    w_ref = maybe_w_ref[0] if maybe_w_ref else None
    tl = q_ref.shape[1]
    s_len = k_ref.shape[1]

    if is_causal:
        # head-invariant: build the mask once per grid step (hoisted out of loop)
        row_base = pl.program_id(1) * tl
        row = lax.broadcasted_iota(jnp.int32, (tl, s_len), 0) + row_base
        col = lax.broadcasted_iota(jnp.int32, (tl, s_len), 1)
        causal_ok = col <= row

    # TODO(synk): for large n_head use lax.fori_loop / a head grid axis instead
    # of a fully unrolled Python loop (bounds vreg live ranges and code size).
    outs = []
    for h in range(n_head):
        q = q_ref[0, :, h * d_k:(h + 1) * d_k]           # bf16, pre-scaled
        k = k_ref[0, :, h * d_k:(h + 1) * d_k]
        v = v_ref[0, :, h * d_v:(h + 1) * d_v]

        # scores: contract trailing dims of both operands -- never form k.T
        s = lax.dot_general(
            q, k, dimension_numbers=(((1,), (1,)), ((), ())),
            preferred_element_type=jnp.float32,
        )  # (tl, S) f32

        if is_causal:
            s = jnp.where(causal_ok, s, -jnp.inf)

        # numerically-stable softmax; exp in bf16 on chips with a bf16 EUP
        m = jnp.max(s, axis=-1, keepdims=True)
        e = jnp.exp((s - m).astype(exp_dtype)).astype(jnp.float32)
        denom = jnp.sum(e, axis=-1, keepdims=True)
        p = e * pl.reciprocal(denom, approx=True)         # EUP slot, ~free

        o = jnp.dot(p.astype(v.dtype), v, preferred_element_type=jnp.float32)
        outs.append(o.astype(o_ref.dtype))
        if w_ref is not None:
            w_ref[0, h] = p.astype(w_ref.dtype)

    # one lane-dense store of all heads (avoids H masked d_v-wide partial stores)
    o_ref[0] = jnp.concatenate(outs, axis=-1)


def _attn_l_block(B, L, S, hdk, hdv, n_head, return_weights, target):
    """Largest L-block (divisor of L, multiple of 8) whose VMEM estimate fits."""
    budget = _vmem_limit_bytes() or (96 << 20)
    budget = int(budget * 0.7)
    cap = target
    if B == 1 and L >= 16:
        cap = min(cap, max(8, L // 2))   # keep >=2 parallel steps for megacore

    def est(tl):
        qb = tl * hdk * 2
        kv = S * (hdk + hdv) * 2
        ob = tl * hdv * 2
        wb = n_head * tl * S * 2 if return_weights else 0
        inter = 3 * tl * S * 4           # s/e/p f32 intermediates (one head live)
        return 2 * (qb + kv + ob + wb) + inter

    best = None
    for cand in range(min(L, cap), 7, -1):
        if L % cand == 0 and cand % 8 == 0:
            if best is None:
                best = cand
            if est(cand) <= budget:
                return cand
    # TODO(synk): flash-style S-tiled path when even the smallest block is too big
    return best if best is not None else L


def mha_attention(q, k, v, *, n_head, d_k, d_v, is_causal=False,
                  return_weights=True, l_block_target=256,
                  weights_dtype=jnp.bfloat16):
    """Scaled dot-product attention with heads packed along the lane dim.

    q: (B, L, H*d_k) bf16 (pre-scaled), k: (B, S, H*d_k), v: (B, S, H*d_v)
    returns (attn_out (B, L, H*d_v) bf16, attn_weight (B, H, L, S) or None)
    """
    B, L, _ = q.shape
    S = k.shape[1]
    hdk = n_head * d_k
    hdv = n_head * d_v
    tl = _attn_l_block(B, L, S, hdk, hdv, n_head, return_weights, l_block_target)
    n_l = L // tl

    kernel = functools.partial(
        _mha_attn_kernel, n_head=n_head, d_k=d_k, d_v=d_v,
        is_causal=is_causal, exp_dtype=_exp_dtype())

    in_specs = [
        pl.BlockSpec((1, tl, hdk), lambda b, l: (b, l, 0)),
        pl.BlockSpec((1, S, hdk), lambda b, l: (b, 0, 0)),
        pl.BlockSpec((1, S, hdv), lambda b, l: (b, 0, 0)),
    ]
    out_spec_o = pl.BlockSpec((1, tl, hdv), lambda b, l: (b, l, 0))
    out_shape_o = jax.ShapeDtypeStruct((B, L, hdv), q.dtype)   # bf16 out

    if return_weights:
        out_shape = (out_shape_o,
                     jax.ShapeDtypeStruct((B, n_head, L, S), weights_dtype))
        out_specs = (out_spec_o,
                     pl.BlockSpec((1, n_head, tl, S), lambda b, l: (b, 0, l, 0)))
    else:
        out_shape = out_shape_o
        out_specs = out_spec_o

    res = pl.pallas_call(
        kernel,
        out_shape=out_shape,
        grid=(B, n_l),
        in_specs=in_specs,
        out_specs=out_specs,
        compiler_params=_compiler_params(("parallel", "parallel")),
    )(q, k, v)

    if return_weights:
        return res
    return res, None


# ----------------------------------------------------------------------------
# MultiHeadAttention forward (JAX glue around the Pallas kernels)
# ----------------------------------------------------------------------------
def init_mha_params(key, d_model, n_head, d_k=None, d_v=None):
    d_k = d_model // n_head if d_k is None else d_k
    d_v = d_model // n_head if d_v is None else d_v
    ks = jax.random.split(key, 8)

    def lin(kw, kb, d_in, d_out):
        bound = 1.0 / math.sqrt(d_in)
        w = jax.random.uniform(kw, (d_in, d_out), jnp.float32, -bound, bound)
        b = jax.random.uniform(kb, (d_out,), jnp.float32, -bound, bound)
        return w, b

    params = {
        "q_proj": lin(ks[0], ks[1], d_model, n_head * d_k),
        "k_proj": lin(ks[2], ks[3], d_model, n_head * d_k),
        "v_proj": lin(ks[4], ks[5], d_model, n_head * d_v),
        "out_proj": lin(ks[6], ks[7], n_head * d_v, d_model),
    }
    cfg = {"d_model": d_model, "n_head": n_head, "d_k": d_k, "d_v": d_v}
    return params, cfg


def multi_head_attention(params, cfg, q_mat, k_mat, v_mat, is_causal=False,
                         return_weights=True,
                         compute_dtype=jnp.bfloat16, weights_dtype=jnp.bfloat16):
    """Matches MultiHeadAttention.forward (eval mode, attn_mask=None).

    q_mat: (B, L, d_model), k_mat/v_mat: (B, S, d_model)
    returns (out (B, L, d_model) f32, attn_weight (B, n_head, L, S) or None)
    """
    B, L, d_model = q_mat.shape
    S = k_mat.shape[1]
    H, d_k, d_v = cfg["n_head"], cfg["d_k"], cfg["d_v"]

    wq, bq = params["q_proj"]
    wk, bk = params["k_proj"]
    wv, bv = params["v_proj"]
    wo, bo = params["out_proj"]
    scale = 1.0 / math.sqrt(d_k)

    if (q_mat is k_mat) and (k_mat is v_mat):
        # self-attention: one fused pass over x, three bf16 outputs, no slicing
        q, k, v = fused_qkv_proj(q_mat.reshape(B * L, d_model), wq, bq, wk, bk,
                                 wv, bv, q_scale=scale, out_dtype=compute_dtype,
                                 compute_dtype=compute_dtype)
    else:
        q = linear(q_mat.reshape(B * L, d_model), wq, bq, out_scale=scale,
                   out_dtype=compute_dtype, compute_dtype=compute_dtype)
        k = linear(k_mat.reshape(B * S, d_model), wk, bk,
                   out_dtype=compute_dtype, compute_dtype=compute_dtype)
        v = linear(v_mat.reshape(B * S, d_model), wv, bv,
                   out_dtype=compute_dtype, compute_dtype=compute_dtype)

    # keep (B, T, H*d) layout -- heads are split inside the kernel (no transpose)
    q = q.reshape(B, L, H * d_k)
    k = k.reshape(B, S, H * d_k)
    v = v.reshape(B, S, H * d_v)

    attn_out, attn_weight = mha_attention(
        q, k, v, n_head=H, d_k=d_k, d_v=d_v, is_causal=is_causal,
        return_weights=return_weights, weights_dtype=weights_dtype)

    # attention output is already lane-dense (B, L, H*d_v) bf16: free reshape
    out = linear(attn_out.reshape(B * L, H * d_v), wo, bo,
                 out_dtype=jnp.float32,
                 compute_dtype=compute_dtype).reshape(B, L, d_model)
    return out, attn_weight


# ----------------------------------------------------------------------------
# Reference (pure JAX, f32) for a sanity check
# ----------------------------------------------------------------------------
def _reference(params, cfg, q_mat, k_mat, v_mat, is_causal=False):
    B, L, d_model = q_mat.shape
    S = k_mat.shape[1]
    H, d_k, d_v = cfg["n_head"], cfg["d_k"], cfg["d_v"]
    wq, bq = params["q_proj"]
    wk, bk = params["k_proj"]
    wv, bv = params["v_proj"]
    wo, bo = params["out_proj"]
    q = (q_mat @ wq + bq).reshape(B, L, H, d_k).transpose(0, 2, 1, 3)
    k = (k_mat @ wk + bk).reshape(B, S, H, d_k).transpose(0, 2, 1, 3)
    v = (v_mat @ wv + bv).reshape(B, S, H, d_v).transpose(0, 2, 1, 3)
    s = jnp.einsum("bhld,bhsd->bhls", q, k) / math.sqrt(d_k)
    if is_causal:
        mask = jnp.tril(jnp.ones((L, S), bool))
        s = jnp.where(mask, s, -jnp.inf)
    p = jax.nn.softmax(s, axis=-1)
    o = jnp.einsum("bhls,bhsd->bhld", p, v)
    o = o.transpose(0, 2, 1, 3).reshape(B, L, H * d_v)
    return o @ wo + bo, p


if __name__ == "__main__":
    key = jax.random.PRNGKey(0)
    kp, kq, kk_, kv = jax.random.split(key, 4)

    B, L, S, d_model, n_head = 2, 8, 8, 32, 4
    params, cfg = init_mha_params(kp, d_model, n_head)

    q_mat = jax.random.normal(kq, (B, L, d_model), jnp.float32)
    k_mat = jax.random.normal(kk_, (B, S, d_model), jnp.float32)
    v_mat = jax.random.normal(kv, (B, S, d_model), jnp.float32)

    # --- cross-attention, no mask ---
    out, attn_w = multi_head_attention(params, cfg, q_mat, k_mat, v_mat,
                                       is_causal=False)
    out = jax.block_until_ready(out)
    attn_w = jax.block_until_ready(attn_w)
    ref_out, ref_w = _reference(params, cfg, q_mat, k_mat, v_mat, is_causal=False)
    assert out.shape == (B, L, d_model)
    assert attn_w.shape == (B, n_head, L, S)
    # bf16 MXU feeds + bf16 storage between kernels -> loose tolerances
    assert jnp.allclose(out, ref_out, atol=3e-2, rtol=3e-2)
    assert jnp.allclose(attn_w.astype(jnp.float32), ref_w, atol=2e-2, rtol=2e-2)

    # --- causal self-attention (fused QKV kernel + causal mask) ---
    out_c, attn_w_c = multi_head_attention(params, cfg, q_mat, q_mat, q_mat,
                                           is_causal=True)
    out_c = jax.block_until_ready(out_c)
    attn_w_c = jax.block_until_ready(attn_w_c)
    ref_out_c, ref_w_c = _reference(params, cfg, q_mat, q_mat, q_mat,
                                    is_causal=True)
    assert jnp.allclose(out_c, ref_out_c, atol=3e-2, rtol=3e-2)
    assert jnp.allclose(attn_w_c.astype(jnp.float32), ref_w_c, atol=2e-2, rtol=2e-2)

    # --- weights not requested (exercises the cheaper no-weights output path) ---
    out_nw, attn_nw = multi_head_attention(params, cfg, q_mat, q_mat, q_mat,
                                           is_causal=True, return_weights=False)
    out_nw = jax.block_until_ready(out_nw)
    assert attn_nw is None
    assert jnp.allclose(out_nw, ref_out_c, atol=3e-2, rtol=3e-2)

    print("KERNEL_OK")
</pallas_src>

<mosaic_0001>
module attributes {stable_mosaic.version = 11 : i64} {
  func.func @_linear_kernel(%arg0: i32, %arg1: i32, %arg2: i32, %arg3: memref<16x32xf32, #tpu.memory_space<vmem>>, %arg4: memref<32x32xf32, #tpu.memory_space<vmem>>, %arg5: memref<1x32xf32, #tpu.memory_space<vmem>>, %arg6: memref<16x32xbf16, #tpu.memory_space<vmem>>, %arg7: memref<16x32xf32, #tpu.memory_space<vmem>>) attributes {dimension_semantics = [#tpu.dimension_semantics<parallel>, #tpu.dimension_semantics<parallel>, #tpu.dimension_semantics<arbitrary>], iteration_bounds = array<i64: 1, 1, 1>, scalar_prefetch = 0 : i64, scratch_operands = 1 : i64, tpu.core_type = #tpu.core_type<tc>, window_params = [{transform_indices = @transform_0, window_bounds = array<i64: 16, 32>}, {transform_indices = @transform_1, window_bounds = array<i64: 32, 32>}, {transform_indices = @transform_2, window_bounds = array<i64: 1, 32>}, {transform_indices = @transform_3, window_bounds = array<i64: 16, 32>}]} {
    %c0_i32 = arith.constant 0 : i32
    %0 = arith.cmpi eq, %arg2, %c0_i32 : i32
    %1 = arith.extui %0 : i1 to i32
    %c0_i32_0 = arith.constant 0 : i32
    %2 = arith.cmpi ne, %1, %c0_i32_0 : i32
    scf.if %2 {
      %cst_10 = arith.constant 0.000000e+00 : f32
      %14 = vector.broadcast %cst_10 : f32 to vector<16x32xf32>
      %c0_11 = arith.constant 0 : index
      %c0_12 = arith.constant 0 : index
      %15 = vector.load %arg7[%c0_11, %c0_12] : memref<16x32xf32, #tpu.memory_space<vmem>>, vector<16x32xf32>
      tpu.vector_store %arg7[%c0_11, %c0_12], %14 {strides = array<i32>} : memref<16x32xf32, #tpu.memory_space<vmem>>, vector<16x32xf32>,
    } else {
    }
    %c0 = arith.constant 0 : index
    %c0_1 = arith.constant 0 : index
    %3 = vector.load %arg7[%c0, %c0_1] : memref<16x32xf32, #tpu.memory_space<vmem>>, vector<16x32xf32>
    %c0_2 = arith.constant 0 : index
    %c0_3 = arith.constant 0 : index
    %4 = vector.load %arg3[%c0_2, %c0_3] : memref<16x32xf32, #tpu.memory_space<vmem>>, vector<16x32xf32>
    %5 = arith.truncf %4 : vector<16x32xf32> to vector<16x32xbf16>
    %c0_4 = arith.constant 0 : index
    %c0_5 = arith.constant 0 : index
    %6 = vector.load %arg4[%c0_4, %c0_5] : memref<32x32xf32, #tpu.memory_space<vmem>>, vector<32x32xf32>
    %7 = arith.truncf %6 : vector<32x32xf32> to vector<32x32xbf16>
    %cst = arith.constant dense<0.000000e+00> : vector<16x32xf32>
    %8 = tpu.matmul %5, %7, %cst {dimension_numbers = #tpu.dot_dimension_numbers<[1], [0], [0], [1], [0, 0, 1, 1], [], []>} : vector<16x32xbf16>, vector<32x32xbf16>, vector<16x32xf32> -> vector<16x32xf32>
    %9 = arith.addf %3, %8 : vector<16x32xf32>
    %c0_6 = arith.constant 0 : index
    %c0_7 = arith.constant 0 : index
    %10 = vector.load %arg7[%c0_6, %c0_7] : memref<16x32xf32, #tpu.memory_space<vmem>>, vector<16x32xf32>
    tpu.vector_store %arg7[%c0_6, %c0_7], %9 {strides = array<i32>} : memref<16x32xf32, #tpu.memory_space<vmem>>, vector<16x32xf32>,
    %c0_i32_8 = arith.constant 0 : i32
    %11 = arith.cmpi eq, %arg2, %c0_i32_8 : i32
    %12 = arith.extui %11 : i1 to i32
    %c0_i32_9 = arith.constant 0 : i32
    %13 = arith.cmpi ne, %12, %c0_i32_9 : i32
    scf.if %13 {
      %c0_10 = arith.constant 0 : index
      %c0_11 = arith.constant 0 : index
      %14 = vector.load %arg7[%c0_10, %c0_11] : memref<16x32xf32, #tpu.memory_space<vmem>>, vector<16x32xf32>
      %c0_12 = arith.constant 0 : index
      %c0_13 = arith.constant 0 : index
      %15 = vector.load %arg5[%c0_12, %c0_13] : memref<1x32xf32, #tpu.memory_space<vmem>>, vector<1x32xf32>
      %16 = vector.broadcast %15 : vector<1x32xf32> to vector<16x32xf32>
      %17 = arith.addf %14, %16 : vector<16x32xf32>
      %cst_14 = arith.constant 0.353553385 : f32
      %18 = vector.broadcast %cst_14 : f32 to vector<16x32xf32>
      %19 = arith.mulf %17, %18 : vector<16x32xf32>
      %20 = arith.truncf %19 : vector<16x32xf32> to vector<16x32xbf16>
      %c0_15 = arith.constant 0 : index
      %c0_16 = arith.constant 0 : index
      %21 = vector.load %arg6[%c0_15, %c0_16] : memref<16x32xbf16, #tpu.memory_space<vmem>>, vector<16x32xbf16>
      tpu.vector_store %arg6[%c0_15, %c0_16], %20 {strides = array<i32>} : memref<16x32xbf16, #tpu.memory_space<vmem>>, vector<16x32xbf16>,
    } else {
    }
    return
  }
  func.func @transform_0(%arg0: i32, %arg1: i32, %arg2: i32) -> (i32, i32) {
    %c0_i32 = arith.constant 0 : i32
    return %arg0, %arg2 : i32, i32
  }
  func.func @transform_1(%arg0: i32, %arg1: i32, %arg2: i32) -> (i32, i32) {
    %c0_i32 = arith.constant 0 : i32
    return %arg2, %arg1 : i32, i32
  }
  func.func @transform_2(%arg0: i32, %arg1: i32, %arg2: i32) -> (i32, i32) {
    %c0_i32 = arith.constant 0 : i32
    %c0_i32_0 = arith.constant 0 : i32
    return %c0_i32, %arg1 : i32, i32
  }
  func.func @transform_3(%arg0: i32, %arg1: i32, %arg2: i32) -> (i32, i32) {
    %c0_i32 = arith.constant 0 : i32
    return %arg0, %arg1 : i32, i32
  }
}

</mosaic_0001>

<bundles_post_ra>
// kernel: tpu_custom_call.1
= control target key start
LH: loop header
LB: loop body
LE: loop exit
PB: predicated region body
PF: predicated region fallthrough
CT: control target
= control target key end

     0   :  { %8 = vsyncpa [#allocation4], 0  ;;  %s294_s0 = inlined_call_operand.hbm [shape: f32[16,32], index: 0, kind: input, shape index: {}]   ;;  %s295_s1 = inlined_call_operand.hbm [shape: f32[32,32], index: 1, kind: input, shape index: {}]   ;;  %s296_s2 = inlined_call_operand.vmem [shape: f32[1,32], index: 2, kind: input, shape index: {}]   ;;  %s297_s3 = inlined_call_operand.hbm [shape: bf16[16,32], index: 3, kind: output, shape index: {}]  }
   0x1   :  { %9 = vsyncpa [#allocation7], 0 }
   0x2   :  { %10 = vsyncpa [#allocation5], 0  ;;  %s248_s12 = smov [#allocation3]  }
   0x3   :  { %s16_s13 = sshll.u32 %s248_s12, 4  ;;  %s17_s13 = int_to_ptr.vmem [resolvable:$true] %s16_s13 }
   0x4   :  { %s190_s14 = scalar_lea.vmem %s17_s13, 256  ;;  %p195_p1 = scmp.lt.s32.totalorder %s17_s13, %s17_s13 }
   0x5   :  { %p191_p0 = scmp.ne.s32.totalorder %s17_s13, %s190_s14  ;;  %p196_p2 = scmp.lt.s32.totalorder %s190_s14, %s190_s14 }
   0x7   :  { %p197_p3 = por %p196_p2, %p195_p1 }
   0x9   :  { %p198_p4 = pnand %p197_p3, %p191_p0 }
   0xb   :  { %201 = shalt.err (!%p198_p4)
}
   0xc   :  { %s249_s15 = smov 128   ;;  %s250_s16 = smov 8  }
   0xd   :  { %22 = dma.hbm_to_vmem [thread:$0]  %s294_s0, 256, %s17_s13, [#allocation4], %s249_s15, %s249_s15, %s250_s16  }
   0xe   :  { %s251_s19 = smov [#allocation6]  }
   0xf   :  { %s28_s20 = sshll.u32 %s251_s19, 4  ;;  %s29_s20 = int_to_ptr.vmem [resolvable:$true] %s28_s20 }
  0x10   :  { %s210_s21 = scalar_lea.vmem %s29_s20, 512  ;;  %p215_p6 = scmp.lt.s32.totalorder %s29_s20, %s29_s20 }
  0x11   :  { %p211_p5 = scmp.ne.s32.totalorder %s29_s20, %s210_s21  ;;  %p216_p7 = scmp.lt.s32.totalorder %s210_s21, %s210_s21 }
  0x13   :  { %p217_p8 = por %p216_p7, %p215_p6 }
  0x15   :  { %p218_p9 = pnand %p217_p8, %p211_p5 }
  0x17   :  { %221 = shalt.err (!%p218_p9)
}
  0x18   :  { %34 = dma.hbm_to_vmem [thread:$0]  %s295_s1, 512, %s29_s20, [#allocation7], %s249_s15, %s249_s15, %s250_s16  }
  0x19   :  { %242 = dma.done.wait [#allocation4], 256  }
  0x1a   :  { %243 = vsyncadd [#allocation4], 4294967040 }
  0x1b   :  { %244 = dma.done.wait [#allocation7], 512  }
  0x1c   :  { %245 = vsyncadd [#allocation7], 4294966784  ;;  %vm48_vm0 = vcmask 261120   ;;  %v252_v0 = vmov 0.0   ;;  %vm253_vm1 = vmmov 0   ;;  %v58_v1 = vld [vmem:[#allocation6 + $0x10] sm:$0xff] }
  0x1d   :  { %165 = vmatprep.subr.bf16.mxu0 %v252_v0  ;;  %169 = vmatprep.mubr.msk.bf16.mxu0 %vm253_vm1, %v252_v0  ;;  %49 = vst.msk [vmem:[#allocation2] sm:$0xff] %vm48_vm0, %v252_v0  ;;  %50 = vst.msk [vmem:[#allocation2 + $0x8] sm:$0xff] %vm48_vm0, %v252_v0  ;;  %v59_v2 = vld [vmem:[#allocation6 + $0x18] sm:$0xff]  ;;  %v56_v3 = vld [vmem:[#allocation6] sm:$0xff]  ;;  %vm135_vm2 = vcmask 257024   ;;  %s254_s24 = smov [#allocation8]  }
  0x1e   :  { %v61_v4 = vpack.c.bf16 %v59_v2, %v58_v1  ;;  %v57_v5 = vld [vmem:[#allocation6 + $0x8] sm:$0xff]  ;;  %v53_v7 = vld [vmem:[#allocation3] sm:$0xff]  ;;  %v54_v8 = vld [vmem:[#allocation3 + $0x8] sm:$0xff]  ;;  %s143_s25 = sshll.u32 %s254_s24, 4  ;;  %s144_s25 = int_to_ptr.vmem [resolvable:$true] %s143_s25 }
  0x1f   :  { %v60_v6 = vpack.c.bf16 %v57_v5, %v56_v3  ;;  %v55_v9 = vpack.c.bf16 %v54_v8, %v53_v7  ;;  %v157_v18 = vld [vmem:[%s296_s2] ss:$0 sm:$0xff]  ;;  %s222_s26 = scalar_lea.vmem %s144_s25, 128  ;;  %p227_p11 = scmp.lt.s32.totalorder %s144_s25, %s144_s25 }
  0x20   :  { %166 = vmatpush3.bf16.msra.mxu0 %v61_v4  ;;  %p223_p10 = scmp.ne.s32.totalorder %s144_s25, %s222_s26  ;;  %p228_p12 = scmp.lt.s32.totalorder %s222_s26, %s222_s26 }
  0x21   :  { %167 = vmatprep.subr.bf16.mxu0 %v252_v0 }
  0x22   :  { %p229_p13 = por %p228_p12, %p227_p11 }
  0x24   :  { %168 = vmatpush3.bf16.msra.mxu0 %v60_v6  ;;  %v51_v10 = vld [vmem:[#allocation2] sm:$0xff]  ;;  %v52_v14 = vld [vmem:[#allocation2 + $0x8] sm:$0xff]  ;;  %p230_p0 = pnand %p229_p13, %p223_p10 }
  0x27   :  { %170 = vmatmul.mubr.msk.bf16.vlgmr.msra.gmra.mxu0 %vm48_vm0, %v55_v9 }
  0xe7   :  { %v100_v11 = vpop.f32.mrf.mxu0 }
  0xe8   :  { %v107_v12 = vadd.f32 %v100_v11, %v51_v10 }
  0xe9   :  { %v171_v13 = vpop.f32.mrf.mxu0 }
  0xea   :  { %109 = vst.msk [vmem:[#allocation2] sm:$0xff] %vm48_vm0, %v107_v12 }
  0xeb   :  { %v103_v15 = vpop.f32.mrf.mxu0 }
  0xec   :  { %v108_v16 = vadd.f32 %v103_v15, %v52_v14 }
  0xed   :  { %v172_v17 = vpop.f32.mrf.mxu0 }
  0xee   :  { %110 = vst.msk [vmem:[#allocation2 + $0x8] sm:$0xff] %vm48_vm0, %v108_v16 }
  0xf1   :  { %v114_v19 = vld [vmem:[#allocation2] sm:$0xff] }
  0xf2   :  { %v123_v20 = vadd.f32 %v157_v18, %v114_v19 }
  0xf4   :  { %v125_v21 = vmul.f32 0.35355338, %v123_v20 }
  0xf5   :  { %v115_v22 = vld [vmem:[#allocation2 + $0x8] sm:$0xff] }
  0xf6   :  { %v124_v23 = vadd.f32 %v157_v18, %v115_v22  ;;  %v160_v24 = vpack.c.bf16 %v125_v21, %v125_v21 }
  0xf8   :  { %v126_v25 = vmul.f32 0.35355338, %v124_v23  ;;  %136 = vst.msk [vmem:[#allocation8] sm:$0xf] %vm135_vm2, %v160_v24 }
  0xfa   :  { %v161_v26 = vpack.c.bf16 %v126_v25, %v126_v25 }
  0xfc   :  { %137 = vst.msk [vmem:[#allocation8 + $0x4] sm:$0xf] %vm135_vm2, %v161_v26 }
  0xfd   :  { %233 = shalt.err (!%p230_p0)
}
  0xfe   :  { %s255_s2 = smov 64   ;;  %s256_s27 = smov 4  }
  0xff   :  { %149 = dma.vmem_to_hbm [thread:$0]  %s144_s25, 128, %s297_s3, [#allocation5], %s255_s2, %s255_s2, %s256_s27  }
 0x100   :  { %246 = dma.done.wait [#allocation5], 128  }
 0x101   :  { %247 = vsyncadd [#allocation5], 4294967168 }
 0x102   :  { %153 = vsyncpa [#allocation4], 1 }
 0x103   :  { %154 = vsyncpa [#allocation7], 1 }
 0x104   :  { %155 = vsyncpa [#allocation5], 1 }

</bundles_post_ra>
